<compile_context>
chip_gen: v7x
topology: tpu7x:2x2x1
jax: 0.10.0
libtpu: 0.0.40
codegen_flags: <defaults>
</compile_context>

<pallas_src>
import functools

import numpy as np
import jax
import jax.numpy as jnp
from jax.experimental import pallas as pl
from jax.experimental.pallas import tpu as pltpu

BN_EPS = 1e-5
# Tap order kh*3 + kw (matches the host-side weight reshape).
_TAPS = tuple((dh, dw) for dh in (-1, 0, 1) for dw in (-1, 0, 1))


# ----------------------------------------------------------------------------
# Fused Pallas kernel: one grid step == one (batch, row-block), all in VMEM.
# ----------------------------------------------------------------------------
def _csp_kernel(x_ref, masks_ref,
                w1_ref, b1_ref,
                wb1_ref, bb1_ref, wb2_ref, bb2_ref,
                w12_ref, b12_ref, w2_ref, b2_ref,
                w3a_ref, w3b_ref, b3_ref,
                o_ref, col_ref, *, W, halo):
    L = x_ref.shape[-1]              # lanes of the (halo-grown) row block
    Lc = o_ref.shape[-1]             # central lanes actually written out
    ch_h = w1_ref.shape[0]
    n_bnecks = wb1_ref.shape[0]
    off = halo * W

    def cbr(w, b, v):
        # conv (BN scale already folded into w) + bias + ReLU.
        # Matmul operands in w.dtype (f32 or bf16), accumulate/elementwise f32.
        y = jnp.dot(w, v.astype(w.dtype), preferred_element_type=jnp.float32) + b
        return jnp.maximum(y, 0.0)

    x = x_ref[0, 0]                                  # (Cin, L), lane-dense
    masks = masks_ref[0]                             # (9, L) 0/1 edge masks
    h = cbr(w1_ref[...], b1_ref[...], x)             # conv1 -> (ch_h, L)

    for i in range(n_bnecks):                        # BottleneckBlock chain
        t = cbr(wb1_ref[i], bb1_ref[i], h)           # 1x1 conv
        # im2col for the 3x3 'same' conv: 9 shifted + edge-masked copies of t,
        # packed DENSELY (slot = ch_h rows per tap) into one (9*ch_h, L) VMEM
        # scratch, then a single K = 9*ch_h matmul.  Lane rolls are XLU work;
        # the halo / image border is handled by the masks (no jnp.pad).
        for tap, (dh, dw) in enumerate(_TAPS):
            d = dh * W + dw                          # flattened spatial shift
            col = t if d == 0 else pltpu.roll(t, (-d) % L, axis=1)
            if (dh, dw) != (0, 0):
                col = col * masks[tap:tap + 1, :]
            col_ref[tap * ch_h:(tap + 1) * ch_h, :] = col.astype(col_ref.dtype)
        h = h + cbr(wb2_ref[i], bb2_ref[i], col_ref[...])   # conv2 + residual

    if halo:                                         # drop the halo rows
        h = h[:, off:off + Lc]
        x = x[:, off:off + Lc]
    x1 = cbr(w12_ref[...], b12_ref[...], h)          # conv1_2
    x2 = cbr(w2_ref[...], b2_ref[...], x)            # conv2
    # conv3 over torch.cat((x1, x2), dim=1) as a split matmul (no concat).
    y3 = (jnp.dot(w3a_ref[...], x1.astype(w3a_ref.dtype),
                  preferred_element_type=jnp.float32)
          + jnp.dot(w3b_ref[...], x2.astype(w3b_ref.dtype),
                    preferred_element_type=jnp.float32)
          + b3_ref[...])
    o_ref[0, 0] = jnp.maximum(y3, 0.0).astype(o_ref.dtype)


# ----------------------------------------------------------------------------
# Host-side parameter folding / layout
# ----------------------------------------------------------------------------
def _fold_bn(p):
    scale = p["gamma"] / jnp.sqrt(p["var"] + BN_EPS)
    bias = p["beta"] + scale * (p["b"] - p["mean"])
    return scale, bias


def prepare_csp_kernel_params(params, matmul_dtype=jnp.float32):
    """Fold BN into the conv weights and lay them out for the kernel."""
    def pw(p):  # 1x1 conv -> (Cout, Cin) weight, (Cout, 1) f32 bias
        s, b = _fold_bn(p)
        return ((s[:, None] * p["w"]).astype(matmul_dtype),
                b[:, None].astype(jnp.float32))

    w1, b1 = pw(params["conv1"])
    w12, b12 = pw(params["conv1_2"])
    w2, b2 = pw(params["conv2"])
    w3, b3 = pw(params["conv3"])
    ch_h = w1.shape[0]

    wb1, bb1, wb2, bb2 = [], [], [], []
    for bp in params["bnecks"]:
        wa, ba = pw(bp["conv1"])
        wb1.append(wa)
        bb1.append(ba)
        s, b = _fold_bn(bp["conv2"])
        w = s[:, None, None, None] * bp["conv2"]["w"]            # (O, I, 3, 3)
        # Dense tap-major K: row index = tap*ch_h + c_in (no per-tap padding).
        w = jnp.transpose(w, (0, 2, 3, 1)).reshape(ch_h, 9 * ch_h)
        wb2.append(w.astype(matmul_dtype))
        bb2.append(b[:, None].astype(jnp.float32))

    return dict(
        w1=w1, b1=b1,
        wb1=jnp.stack(wb1), bb1=jnp.stack(bb1),
        wb2=jnp.stack(wb2), bb2=jnp.stack(bb2),
        w12=w12, b12=b12, w2=w2, b2=b2,
        w3a=w3[:, :ch_h], w3b=w3[:, ch_h:], b3=b3,
    )


# ----------------------------------------------------------------------------
# Spatial row tiling helpers (halo = bnecks rows of 3x3 receptive-field growth)
# ----------------------------------------------------------------------------
def _choose_row_tile(H, W, ch_h, c_in, ch_out, n_bnecks, budget_bytes=4 << 20):
    """Rows per grid step so the per-step VMEM footprint stays ~MiB-scale."""
    def step_bytes(th):
        halo = n_bnecks if th < H else 0
        L = (th + 2 * halo) * W
        col = 9 * ch_h * L * 4                       # im2col scratch
        io = 2 * ((c_in + 9) * L + ch_out * th * W) * 4   # double-buffered I/O
        act = 6 * ch_h * L * 4                       # live activation values
        return col + io + act

    if step_bytes(H) <= budget_bytes:
        return H                                     # small image: no tiling
    cands = [th for th in range(H, 0, -1) if H % th == 0
             and step_bytes(th) <= budget_bytes]
    for th in cands:                                 # prefer lane-dense blocks
        if ((th + 2 * n_bnecks) * W) % 128 == 0 and (th * W) % 128 == 0:
            return th
    for th in cands:
        if ((th + 2 * n_bnecks) * W) % 128 == 0:
            return th
    # TODO(synk): relax the 128-lane-multiple requirement on the rolled block
    # once pltpu.roll over non-multiple lane extents is validated everywhere.
    return cands[0] if cands else H


def _restage_rows(x_nchw, th, halo):
    """(N,C,H,W) -> (N, n_rb, C, (th+2*halo)*W) overlapping row blocks."""
    N, C, H, W = x_nchw.shape
    n_rb = H // th
    xp = x_nchw if halo == 0 else jnp.pad(
        x_nchw, ((0, 0), (0, 0), (halo, halo), (0, 0)))
    blocks = [xp[:, :, rb * th: rb * th + th + 2 * halo, :]
              for rb in range(n_rb)]
    xb = jnp.stack(blocks, axis=1)                   # (N, n_rb, C, rows, W)
    return xb.reshape(N, n_rb, C, (th + 2 * halo) * W)


def _build_tap_masks(H, W, th, halo):
    """(n_rb, 9, rows*W) 0/1 masks zeroing 3x3 taps that leave the image."""
    n_rb = H // th
    rows = th + 2 * halo
    ww = np.arange(W)
    masks = np.zeros((n_rb, 9, rows * W), np.float32)
    for rb in range(n_rb):
        gr = rb * th - halo + np.arange(rows)        # global row per local row
        for tap, (dh, dw) in enumerate(_TAPS):
            ok = ((gr[:, None] + dh >= 0) & (gr[:, None] + dh < H) &
                  (ww[None, :] + dw >= 0) & (ww[None, :] + dw < W))
            masks[rb, tap] = ok.reshape(-1)
    return masks


# ----------------------------------------------------------------------------
# CspBlock forward (single pallas_call) and pure-JAX reference
# ----------------------------------------------------------------------------
def csp_block_pallas(x_nchw, kp, *, row_tile=None):
    N, c_in, H, W = x_nchw.shape
    ch_h = kp["w1"].shape[0]
    ch_out = kp["w3a"].shape[0]
    n_bnecks = kp["wb1"].shape[0]
    mm_dtype = kp["w1"].dtype

    th = row_tile if row_tile is not None else _choose_row_tile(
        H, W, ch_h, c_in, ch_out, n_bnecks)
    assert H % th == 0, "row tile must divide H"
    n_rb = H // th
    halo = n_bnecks if n_rb > 1 else 0               # 3x3 receptive-field halo
    L = (th + 2 * halo) * W
    Lc = th * W
    assert L % 128 == 0, "halo'd row block must fill whole lane tiles"

    xb = _restage_rows(x_nchw, th, halo)                     # (N,n_rb,Cin,L)
    masks = jnp.asarray(_build_tap_masks(H, W, th, halo))    # (n_rb,9,L)

    def bcast(arr):  # full-array block, replicated across the grid
        zeros = (0,) * arr.ndim
        return pl.BlockSpec(arr.shape, lambda n, rb, _z=zeros: _z)

    args = (xb, masks, kp["w1"], kp["b1"], kp["wb1"], kp["bb1"], kp["wb2"],
            kp["bb2"], kp["w12"], kp["b12"], kp["w2"], kp["b2"],
            kp["w3a"], kp["w3b"], kp["b3"])
    # TODO(synk): mark the constant-index weight/bias specs with
    # pipeline_mode=pl.Buffered(1) (single buffer) once validated; they are
    # tiny here but matter for v7x's 64 MiB VMEM at realistic channel counts.
    in_specs = [pl.BlockSpec((1, 1, c_in, L), lambda n, rb: (n, rb, 0, 0)),
                pl.BlockSpec((1, 9, L), lambda n, rb: (rb, 0, 0))]
    in_specs += [bcast(a) for a in args[2:]]

    out = pl.pallas_call(
        functools.partial(_csp_kernel, W=W, halo=halo),
        out_shape=jax.ShapeDtypeStruct((N, n_rb, ch_out, Lc), jnp.float32),
        grid_spec=pltpu.PrefetchScalarGridSpec(
            num_scalar_prefetch=0,
            grid=(N, n_rb),
            in_specs=in_specs,
            out_specs=pl.BlockSpec((1, 1, ch_out, Lc),
                                   lambda n, rb: (n, rb, 0, 0)),
            scratch_shapes=[pltpu.VMEM((9 * ch_h, L), mm_dtype)]),
        compiler_params=pltpu.CompilerParams(
            dimension_semantics=("parallel", "parallel")),
    )(*args)
    # TODO(synk): for large N with tiny images, fold several images onto the
    # lane axis per grid step (the tap masks already zero cross-image wrap).
    out = out.reshape(N, n_rb, ch_out, th, W).transpose(0, 2, 1, 3, 4)
    return out.reshape(N, ch_out, H, W)


def init_conv_block(key, cin, cout, k):
    kw, kb, kg, kbt, km, kv = jax.random.split(key, 6)
    shape = (cout, cin) if k == 1 else (cout, cin, k, k)     # torch OIHW
    return dict(
        w=0.2 * jax.random.normal(kw, shape, jnp.float32),
        b=0.1 * jax.random.normal(kb, (cout,), jnp.float32),
        gamma=1.0 + 0.1 * jax.random.normal(kg, (cout,), jnp.float32),
        beta=0.1 * jax.random.normal(kbt, (cout,), jnp.float32),
        mean=0.1 * jax.random.normal(km, (cout,), jnp.float32),
        var=1.0 + 0.1 * jax.random.uniform(kv, (cout,), jnp.float32),
    )


def init_csp_params(key, ch_in, ch_out, bnecks, expansion=0.5):
    ch_h = int(ch_in * expansion)
    keys = jax.random.split(key, 4 + 2 * bnecks)
    return dict(
        conv1=init_conv_block(keys[0], ch_in, ch_h, 1),
        conv1_2=init_conv_block(keys[1], ch_h, ch_h, 1),
        conv2=init_conv_block(keys[2], ch_in, ch_h, 1),
        conv3=init_conv_block(keys[3], 2 * ch_h, ch_out, 1),
        bnecks=[dict(conv1=init_conv_block(keys[4 + 2 * i], ch_h, ch_h, 1),
                     conv2=init_conv_block(keys[5 + 2 * i], ch_h, ch_h, 3))
                for i in range(bnecks)],
    )


def _ref_conv_block(x, p, k):
    w = p["w"][:, :, None, None] if k == 1 else p["w"]       # OIHW
    y = jax.lax.conv_general_dilated(
        x, w, window_strides=(1, 1), padding="SAME",
        dimension_numbers=("NCHW", "OIHW", "NCHW"))
    y = y + p["b"][None, :, None, None]
    scale = p["gamma"] / jnp.sqrt(p["var"] + BN_EPS)
    y = (scale[None, :, None, None] * (y - p["mean"][None, :, None, None])
         + p["beta"][None, :, None, None])
    return jnp.maximum(y, 0.0)


def csp_block_ref(x, params):
    h = _ref_conv_block(x, params["conv1"], 1)
    for bp in params["bnecks"]:
        t = _ref_conv_block(h, bp["conv1"], 1)
        h = h + _ref_conv_block(t, bp["conv2"], 3)
    x1 = _ref_conv_block(h, params["conv1_2"], 1)
    x2 = _ref_conv_block(x, params["conv2"], 1)
    return _ref_conv_block(jnp.concatenate([x1, x2], axis=1),
                           params["conv3"], 1)


# ----------------------------------------------------------------------------
if __name__ == "__main__":
    # CspBlock(ch_in=8, ch_out=8, bnecks=2) -> ch_hidden = 4; NCHW input.
    N, CH_IN, H, W, CH_OUT, BNECKS = 2, 8, 16, 16, 8, 2

    root = jax.random.PRNGKey(0)
    kx, kparam = jax.random.split(root)
    x = jax.random.normal(kx, (N, CH_IN, H, W), jnp.float32)
    params = init_csp_params(kparam, CH_IN, CH_OUT, BNECKS)
    ref = jax.block_until_ready(csp_block_ref(x, params))

    fwd = jax.jit(csp_block_pallas)

    # 1) f32 matmuls, auto-chosen tile (whole image per grid step at this size).
    kp32 = prepare_csp_kernel_params(params)
    out = jax.block_until_ready(fwd(x, kp32))
    assert out.shape == (N, CH_OUT, H, W), out.shape
    err = float(jnp.max(jnp.abs(out - ref)))
    assert jnp.allclose(out, ref, rtol=1e-3, atol=1e-3), f"f32 max err {err}"

    # 2) f32 matmuls with forced spatial row tiling (4 rows + 2-row halo each
    #    side) to exercise/validate the VMEM-bounded path used at large H*W.
    fwd_tiled = jax.jit(functools.partial(csp_block_pallas, row_tile=4))
    out_t = jax.block_until_ready(fwd_tiled(x, kp32))
    err_t = float(jnp.max(jnp.abs(out_t - ref)))
    assert jnp.allclose(out_t, ref, rtol=1e-3, atol=1e-3), \
        f"tiled max err {err_t}"

    # 3) bf16 matmul operands (f32 accumulate + f32 elementwise), looser tol.
    kp16 = prepare_csp_kernel_params(params, matmul_dtype=jnp.bfloat16)
    out_bf = jax.block_until_ready(fwd(x, kp16))
    err_bf = float(jnp.max(jnp.abs(out_bf - ref)))
    assert jnp.allclose(out_bf, ref, rtol=5e-2, atol=1e-1), \
        f"bf16 max err {err_bf}"

    print("KERNEL_OK")
</pallas_src>

<mosaic_0001>
module attributes {stable_mosaic.version = 11 : i64} {
  func.func @_csp_kernel(%arg0: i32, %arg1: i32, %arg2: memref<1x1x8x256xf32, #tpu.memory_space<vmem>>, %arg3: memref<1x9x256xf32, #tpu.memory_space<vmem>>, %arg4: memref<4x8xf32, #tpu.memory_space<vmem>>, %arg5: memref<4x1xf32, #tpu.memory_space<vmem>>, %arg6: memref<2x4x4xf32, #tpu.memory_space<vmem>>, %arg7: memref<2x4x1xf32, #tpu.memory_space<vmem>>, %arg8: memref<2x4x36xf32, #tpu.memory_space<vmem>>, %arg9: memref<2x4x1xf32, #tpu.memory_space<vmem>>, %arg10: memref<4x4xf32, #tpu.memory_space<vmem>>, %arg11: memref<4x1xf32, #tpu.memory_space<vmem>>, %arg12: memref<4x8xf32, #tpu.memory_space<vmem>>, %arg13: memref<4x1xf32, #tpu.memory_space<vmem>>, %arg14: memref<8x4xf32, #tpu.memory_space<vmem>>, %arg15: memref<8x4xf32, #tpu.memory_space<vmem>>, %arg16: memref<8x1xf32, #tpu.memory_space<vmem>>, %arg17: memref<1x1x8x256xf32, #tpu.memory_space<vmem>>, %arg18: memref<36x256xf32, #tpu.memory_space<vmem>>) attributes {dimension_semantics = [#tpu.dimension_semantics<parallel>, #tpu.dimension_semantics<parallel>], iteration_bounds = array<i64: 2, 1>, scalar_prefetch = 0 : i64, scratch_operands = 1 : i64, tpu.core_type = #tpu.core_type<tc>, window_params = [{transform_indices = @transform_0, window_bounds = array<i64: 1, 1, 8, 256>}, {transform_indices = @transform_1, window_bounds = array<i64: 1, 9, 256>}, {pipeline_mode = #tpu.pipeline_mode<synchronous>, transform_indices = @transform_2, window_bounds = array<i64: 4, 8>}, {pipeline_mode = #tpu.pipeline_mode<synchronous>, transform_indices = @transform_3, window_bounds = array<i64: 4, 1>}, {pipeline_mode = #tpu.pipeline_mode<synchronous>, transform_indices = @transform_4, window_bounds = array<i64: 2, 4, 4>}, {pipeline_mode = #tpu.pipeline_mode<synchronous>, transform_indices = @transform_5, window_bounds = array<i64: 2, 4, 1>}, {pipeline_mode = #tpu.pipeline_mode<synchronous>, transform_indices = @transform_6, window_bounds = array<i64: 2, 4, 36>}, {pipeline_mode = #tpu.pipeline_mode<synchronous>, transform_indices = @transform_7, window_bounds = array<i64: 2, 4, 1>}, {pipeline_mode = #tpu.pipeline_mode<synchronous>, transform_indices = @transform_8, window_bounds = array<i64: 4, 4>}, {pipeline_mode = #tpu.pipeline_mode<synchronous>, transform_indices = @transform_9, window_bounds = array<i64: 4, 1>}, {pipeline_mode = #tpu.pipeline_mode<synchronous>, transform_indices = @transform_10, window_bounds = array<i64: 4, 8>}, {pipeline_mode = #tpu.pipeline_mode<synchronous>, transform_indices = @transform_11, window_bounds = array<i64: 4, 1>}, {pipeline_mode = #tpu.pipeline_mode<synchronous>, transform_indices = @transform_12, window_bounds = array<i64: 8, 4>}, {pipeline_mode = #tpu.pipeline_mode<synchronous>, transform_indices = @transform_13, window_bounds = array<i64: 8, 4>}, {pipeline_mode = #tpu.pipeline_mode<synchronous>, transform_indices = @transform_14, window_bounds = array<i64: 8, 1>}, {transform_indices = @transform_15, window_bounds = array<i64: 1, 1, 8, 256>}]} {
    %c0 = arith.constant 0 : index
    %c0_0 = arith.constant 0 : index
    %c0_1 = arith.constant 0 : index
    %c0_2 = arith.constant 0 : index
    %0 = vector.load %arg2[%c0, %c0_0, %c0_1, %c0_2] : memref<1x1x8x256xf32, #tpu.memory_space<vmem>>, vector<1x1x8x256xf32>
    %1 = vector.shape_cast %0 : vector<1x1x8x256xf32> to vector<8x256xf32>
    %c0_3 = arith.constant 0 : index
    %c0_4 = arith.constant 0 : index
    %c0_5 = arith.constant 0 : index
    %2 = vector.load %arg3[%c0_3, %c0_4, %c0_5] : memref<1x9x256xf32, #tpu.memory_space<vmem>>, vector<1x9x256xf32>
    %3 = vector.shape_cast %2 : vector<1x9x256xf32> to vector<9x256xf32>
    %c0_6 = arith.constant 0 : index
    %c0_7 = arith.constant 0 : index
    %4 = vector.load %arg4[%c0_6, %c0_7] : memref<4x8xf32, #tpu.memory_space<vmem>>, vector<4x8xf32>
    %c0_8 = arith.constant 0 : index
    %c0_9 = arith.constant 0 : index
    %5 = vector.load %arg5[%c0_8, %c0_9] : memref<4x1xf32, #tpu.memory_space<vmem>>, vector<4x1xf32>
    %cst = arith.constant dense<0.000000e+00> : vector<4x256xf32>
    %6 = tpu.matmul %4, %1, %cst {dimension_numbers = #tpu.dot_dimension_numbers<[1], [0], [0], [1], [0, 0, 1, 1], [], []>} : vector<4x8xf32>, vector<8x256xf32>, vector<4x256xf32> -> vector<4x256xf32>
    %7 = vector.broadcast %5 : vector<4x1xf32> to vector<4x256xf32>
    %8 = arith.addf %6, %7 : vector<4x256xf32>
    %cst_10 = arith.constant 0.000000e+00 : f32
    %9 = vector.broadcast %cst_10 : f32 to vector<4x256xf32>
    %10 = arith.maximumf %8, %9 : vector<4x256xf32>
    %c0_11 = arith.constant 0 : index
    %c0_12 = arith.constant 0 : index
    %c0_13 = arith.constant 0 : index
    %11 = vector.load %arg6[%c0_11, %c0_12, %c0_13] : memref<2x4x4xf32, #tpu.memory_space<vmem>>, vector<1x4x4xf32>
    %12 = vector.shape_cast %11 : vector<1x4x4xf32> to vector<4x4xf32>
    %c0_14 = arith.constant 0 : index
    %c0_15 = arith.constant 0 : index
    %c0_16 = arith.constant 0 : index
    %13 = vector.load %arg7[%c0_14, %c0_15, %c0_16] : memref<2x4x1xf32, #tpu.memory_space<vmem>>, vector<1x4x1xf32>
    %14 = vector.shape_cast %13 : vector<1x4x1xf32> to vector<4x1xf32>
    %cst_17 = arith.constant dense<0.000000e+00> : vector<4x256xf32>
    %15 = tpu.matmul %12, %10, %cst_17 {dimension_numbers = #tpu.dot_dimension_numbers<[1], [0], [0], [1], [0, 0, 1, 1], [], []>} : vector<4x4xf32>, vector<4x256xf32>, vector<4x256xf32> -> vector<4x256xf32>
    %16 = vector.broadcast %14 : vector<4x1xf32> to vector<4x256xf32>
    %17 = arith.addf %15, %16 : vector<4x256xf32>
    %cst_18 = arith.constant 0.000000e+00 : f32
    %18 = vector.broadcast %cst_18 : f32 to vector<4x256xf32>
    %19 = arith.maximumf %17, %18 : vector<4x256xf32>
    %c17_i32 = arith.constant 17 : i32
    %20 = tpu.dynamic_rotate %19 by %c17_i32 dim 1 : vector<4x256xf32>, i32 -> vector<4x256xf32>
    %21 = vector.extract_strided_slice %3 {offsets = [0, 0], sizes = [1, 256], strides = [1, 1]} : vector<9x256xf32> to vector<1x256xf32>
    %22 = vector.broadcast %21 : vector<1x256xf32> to vector<4x256xf32>
    %23 = arith.mulf %20, %22 : vector<4x256xf32>
    %c0_19 = arith.constant 0 : index
    %c0_20 = arith.constant 0 : index
    %24 = vector.load %arg18[%c0_19, %c0_20] : memref<36x256xf32, #tpu.memory_space<vmem>>, vector<4x256xf32>
    tpu.vector_store %arg18[%c0_19, %c0_20], %23 {strides = array<i32>} : memref<36x256xf32, #tpu.memory_space<vmem>>, vector<4x256xf32>,
    %c16_i32 = arith.constant 16 : i32
    %25 = tpu.dynamic_rotate %19 by %c16_i32 dim 1 : vector<4x256xf32>, i32 -> vector<4x256xf32>
    %26 = vector.extract_strided_slice %3 {offsets = [1, 0], sizes = [1, 256], strides = [1, 1]} : vector<9x256xf32> to vector<1x256xf32>
    %27 = vector.broadcast %26 : vector<1x256xf32> to vector<4x256xf32>
    %28 = arith.mulf %25, %27 : vector<4x256xf32>
    %c4 = arith.constant 4 : index
    %c0_21 = arith.constant 0 : index
    %29 = vector.load %arg18[%c4, %c0_21] : memref<36x256xf32, #tpu.memory_space<vmem>>, vector<4x256xf32>
    tpu.vector_store %arg18[%c4, %c0_21], %28 {strides = array<i32>} : memref<36x256xf32, #tpu.memory_space<vmem>>, vector<4x256xf32>,
    %c15_i32 = arith.constant 15 : i32
    %30 = tpu.dynamic_rotate %19 by %c15_i32 dim 1 : vector<4x256xf32>, i32 -> vector<4x256xf32>
    %31 = vector.extract_strided_slice %3 {offsets = [2, 0], sizes = [1, 256], strides = [1, 1]} : vector<9x256xf32> to vector<1x256xf32>
    %32 = vector.broadcast %31 : vector<1x256xf32> to vector<4x256xf32>
    %33 = arith.mulf %30, %32 : vector<4x256xf32>
    %c8 = arith.constant 8 : index
    %c0_22 = arith.constant 0 : index
    %34 = vector.load %arg18[%c8, %c0_22] : memref<36x256xf32, #tpu.memory_space<vmem>>, vector<4x256xf32>
    tpu.vector_store %arg18[%c8, %c0_22], %33 {strides = array<i32>} : memref<36x256xf32, #tpu.memory_space<vmem>>, vector<4x256xf32>,
    %c1_i32 = arith.constant 1 : i32
    %35 = tpu.dynamic_rotate %19 by %c1_i32 dim 1 : vector<4x256xf32>, i32 -> vector<4x256xf32>
    %36 = vector.extract_strided_slice %3 {offsets = [3, 0], sizes = [1, 256], strides = [1, 1]} : vector<9x256xf32> to vector<1x256xf32>
    %37 = vector.broadcast %36 : vector<1x256xf32> to vector<4x256xf32>
    %38 = arith.mulf %35, %37 : vector<4x256xf32>
    %c12 = arith.constant 12 : index
    %c0_23 = arith.constant 0 : index
    %39 = vector.load %arg18[%c12, %c0_23] : memref<36x256xf32, #tpu.memory_space<vmem>>, vector<4x256xf32>
    tpu.vector_store %arg18[%c12, %c0_23], %38 {strides = array<i32>} : memref<36x256xf32, #tpu.memory_space<vmem>>, vector<4x256xf32>,
    %c16 = arith.constant 16 : index
    %c0_24 = arith.constant 0 : index
    %40 = vector.load %arg18[%c16, %c0_24] : memref<36x256xf32, #tpu.memory_space<vmem>>, vector<4x256xf32>
    tpu.vector_store %arg18[%c16, %c0_24], %19 {strides = array<i32>} : memref<36x256xf32, #tpu.memory_space<vmem>>, vector<4x256xf32>,
    %c255_i32 = arith.constant 255 : i32
    %41 = tpu.dynamic_rotate %19 by %c255_i32 dim 1 : vector<4x256xf32>, i32 -> vector<4x256xf32>
    %42 = vector.extract_strided_slice %3 {offsets = [5, 0], sizes = [1, 256], strides = [1, 1]} : vector<9x256xf32> to vector<1x256xf32>
    %43 = vector.broadcast %42 : vector<1x256xf32> to vector<4x256xf32>
    %44 = arith.mulf %41, %43 : vector<4x256xf32>
    %c20 = arith.constant 20 : index
    %c0_25 = arith.constant 0 : index
    %45 = vector.load %arg18[%c20, %c0_25] : memref<36x256xf32, #tpu.memory_space<vmem>>, vector<4x256xf32>
    tpu.vector_store %arg18[%c20, %c0_25], %44 {strides = array<i32>} : memref<36x256xf32, #tpu.memory_space<vmem>>, vector<4x256xf32>,
    %c241_i32 = arith.constant 241 : i32
    %46 = tpu.dynamic_rotate %19 by %c241_i32 dim 1 : vector<4x256xf32>, i32 -> vector<4x256xf32>
    %47 = vector.extract_strided_slice %3 {offsets = [6, 0], sizes = [1, 256], strides = [1, 1]} : vector<9x256xf32> to vector<1x256xf32>
    %48 = vector.broadcast %47 : vector<1x256xf32> to vector<4x256xf32>
    %49 = arith.mulf %46, %48 : vector<4x256xf32>
    %c24 = arith.constant 24 : index
    %c0_26 = arith.constant 0 : index
    %50 = vector.load %arg18[%c24, %c0_26] : memref<36x256xf32, #tpu.memory_space<vmem>>, vector<4x256xf32>
    tpu.vector_store %arg18[%c24, %c0_26], %49 {strides = array<i32>} : memref<36x256xf32, #tpu.memory_space<vmem>>, vector<4x256xf32>,
    %c240_i32 = arith.constant 240 : i32
    %51 = tpu.dynamic_rotate %19 by %c240_i32 dim 1 : vector<4x256xf32>, i32 -> vector<4x256xf32>
    %52 = vector.extract_strided_slice %3 {offsets = [7, 0], sizes = [1, 256], strides = [1, 1]} : vector<9x256xf32> to vector<1x256xf32>
    %53 = vector.broadcast %52 : vector<1x256xf32> to vector<4x256xf32>
    %54 = arith.mulf %51, %53 : vector<4x256xf32>
    %c28 = arith.constant 28 : index
    %c0_27 = arith.constant 0 : index
    %55 = vector.load %arg18[%c28, %c0_27] : memref<36x256xf32, #tpu.memory_space<vmem>>, vector<4x256xf32>
    tpu.vector_store %arg18[%c28, %c0_27], %54 {strides = array<i32>} : memref<36x256xf32, #tpu.memory_space<vmem>>, vector<4x256xf32>,
    %c239_i32 = arith.constant 239 : i32
    %56 = tpu.dynamic_rotate %19 by %c239_i32 dim 1 : vector<4x256xf32>, i32 -> vector<4x256xf32>
    %57 = vector.extract_strided_slice %3 {offsets = [8, 0], sizes = [1, 256], strides = [1, 1]} : vector<9x256xf32> to vector<1x256xf32>
    %58 = vector.broadcast %57 : vector<1x256xf32> to vector<4x256xf32>
    %59 = arith.mulf %56, %58 : vector<4x256xf32>
    %c32 = arith.constant 32 : index
    %c0_28 = arith.constant 0 : index
    %60 = vector.load %arg18[%c32, %c0_28] : memref<36x256xf32, #tpu.memory_space<vmem>>, vector<4x256xf32>
    tpu.vector_store %arg18[%c32, %c0_28], %59 {strides = array<i32>} : memref<36x256xf32, #tpu.memory_space<vmem>>, vector<4x256xf32>,
    %c0_29 = arith.constant 0 : index
    %c0_30 = arith.constant 0 : index
    %c0_31 = arith.constant 0 : index
    %61 = vector.load %arg8[%c0_29, %c0_30, %c0_31] : memref<2x4x36xf32, #tpu.memory_space<vmem>>, vector<1x4x36xf32>
    %62 = vector.shape_cast %61 : vector<1x4x36xf32> to vector<4x36xf32>
    %c0_32 = arith.constant 0 : index
    %c0_33 = arith.constant 0 : index
    %c0_34 = arith.constant 0 : index
    %63 = vector.load %arg9[%c0_32, %c0_33, %c0_34] : memref<2x4x1xf32, #tpu.memory_space<vmem>>, vector<1x4x1xf32>
    %64 = vector.shape_cast %63 : vector<1x4x1xf32> to vector<4x1xf32>
    %c0_35 = arith.constant 0 : index
    %c0_36 = arith.constant 0 : index
    %65 = vector.load %arg18[%c0_35, %c0_36] : memref<36x256xf32, #tpu.memory_space<vmem>>, vector<36x256xf32>
    %cst_37 = arith.constant dense<0.000000e+00> : vector<4x256xf32>
    %66 = tpu.matmul %62, %65, %cst_37 {dimension_numbers = #tpu.dot_dimension_numbers<[1], [0], [0], [1], [0, 0, 1, 1], [], []>} : vector<4x36xf32>, vector<36x256xf32>, vector<4x256xf32> -> vector<4x256xf32>
    %67 = vector.broadcast %64 : vector<4x1xf32> to vector<4x256xf32>
    %68 = arith.addf %66, %67 : vector<4x256xf32>
    %cst_38 = arith.constant 0.000000e+00 : f32
    %69 = vector.broadcast %cst_38 : f32 to vector<4x256xf32>
    %70 = arith.maximumf %68, %69 : vector<4x256xf32>
    %71 = arith.addf %10, %70 : vector<4x256xf32>
    %c1 = arith.constant 1 : index
    %c0_39 = arith.constant 0 : index
    %c0_40 = arith.constant 0 : index
    %72 = vector.load %arg6[%c1, %c0_39, %c0_40] : memref<2x4x4xf32, #tpu.memory_space<vmem>>, vector<1x4x4xf32>
    %73 = vector.shape_cast %72 : vector<1x4x4xf32> to vector<4x4xf32>
    %c1_41 = arith.constant 1 : index
    %c0_42 = arith.constant 0 : index
    %c0_43 = arith.constant 0 : index
    %74 = vector.load %arg7[%c1_41, %c0_42, %c0_43] : memref<2x4x1xf32, #tpu.memory_space<vmem>>, vector<1x4x1xf32>
    %75 = vector.shape_cast %74 : vector<1x4x1xf32> to vector<4x1xf32>
    %cst_44 = arith.constant dense<0.000000e+00> : vector<4x256xf32>
    %76 = tpu.matmul %73, %71, %cst_44 {dimension_numbers = #tpu.dot_dimension_numbers<[1], [0], [0], [1], [0, 0, 1, 1], [], []>} : vector<4x4xf32>, vector<4x256xf32>, vector<4x256xf32> -> vector<4x256xf32>
    %77 = vector.broadcast %75 : vector<4x1xf32> to vector<4x256xf32>
    %78 = arith.addf %76, %77 : vector<4x256xf32>
    %cst_45 = arith.constant 0.000000e+00 : f32
    %79 = vector.broadcast %cst_45 : f32 to vector<4x256xf32>
    %80 = arith.maximumf %78, %79 : vector<4x256xf32>
    %c17_i32_46 = arith.constant 17 : i32
    %81 = tpu.dynamic_rotate %80 by %c17_i32_46 dim 1 : vector<4x256xf32>, i32 -> vector<4x256xf32>
    %82 = vector.extract_strided_slice %3 {offsets = [0, 0], sizes = [1, 256], strides = [1, 1]} : vector<9x256xf32> to vector<1x256xf32>
    %83 = vector.broadcast %82 : vector<1x256xf32> to vector<4x256xf32>
    %84 = arith.mulf %81, %83 : vector<4x256xf32>
    %c0_47 = arith.constant 0 : index
    %c0_48 = arith.constant 0 : index
    %85 = vector.load %arg18[%c0_47, %c0_48] : memref<36x256xf32, #tpu.memory_space<vmem>>, vector<4x256xf32>
    tpu.vector_store %arg18[%c0_47, %c0_48], %84 {strides = array<i32>} : memref<36x256xf32, #tpu.memory_space<vmem>>, vector<4x256xf32>,
    %c16_i32_49 = arith.constant 16 : i32
    %86 = tpu.dynamic_rotate %80 by %c16_i32_49 dim 1 : vector<4x256xf32>, i32 -> vector<4x256xf32>
    %87 = vector.extract_strided_slice %3 {offsets = [1, 0], sizes = [1, 256], strides = [1, 1]} : vector<9x256xf32> to vector<1x256xf32>
    %88 = vector.broadcast %87 : vector<1x256xf32> to vector<4x256xf32>
    %89 = arith.mulf %86, %88 : vector<4x256xf32>
    %c4_50 = arith.constant 4 : index
    %c0_51 = arith.constant 0 : index
    %90 = vector.load %arg18[%c4_50, %c0_51] : memref<36x256xf32, #tpu.memory_space<vmem>>, vector<4x256xf32>
    tpu.vector_store %arg18[%c4_50, %c0_51], %89 {strides = array<i32>} : memref<36x256xf32, #tpu.memory_space<vmem>>, vector<4x256xf32>,
    %c15_i32_52 = arith.constant 15 : i32
    %91 = tpu.dynamic_rotate %80 by %c15_i32_52 dim 1 : vector<4x256xf32>, i32 -> vector<4x256xf32>
    %92 = vector.extract_strided_slice %3 {offsets = [2, 0], sizes = [1, 256], strides = [1, 1]} : vector<9x256xf32> to vector<1x256xf32>
    %93 = vector.broadcast %92 : vector<1x256xf32> to vector<4x256xf32>
    %94 = arith.mulf %91, %93 : vector<4x256xf32>
    %c8_53 = arith.constant 8 : index
    %c0_54 = arith.constant 0 : index
    %95 = vector.load %arg18[%c8_53, %c0_54] : memref<36x256xf32, #tpu.memory_space<vmem>>, vector<4x256xf32>
    tpu.vector_store %arg18[%c8_53, %c0_54], %94 {strides = array<i32>} : memref<36x256xf32, #tpu.memory_space<vmem>>, vector<4x256xf32>,
    %c1_i32_55 = arith.constant 1 : i32
    %96 = tpu.dynamic_rotate %80 by %c1_i32_55 dim 1 : vector<4x256xf32>, i32 -> vector<4x256xf32>
    %97 = vector.extract_strided_slice %3 {offsets = [3, 0], sizes = [1, 256], strides = [1, 1]} : vector<9x256xf32> to vector<1x256xf32>
    %98 = vector.broadcast %97 : vector<1x256xf32> to vector<4x256xf32>
    %99 = arith.mulf %96, %98 : vector<4x256xf32>
    %c12_56 = arith.constant 12 : index
    %c0_57 = arith.constant 0 : index
    %100 = vector.load %arg18[%c12_56, %c0_57] : memref<36x256xf32, #tpu.memory_space<vmem>>, vector<4x256xf32>
    tpu.vector_store %arg18[%c12_56, %c0_57], %99 {strides = array<i32>} : memref<36x256xf32, #tpu.memory_space<vmem>>, vector<4x256xf32>,
    %c16_58 = arith.constant 16 : index
    %c0_59 = arith.constant 0 : index
    %101 = vector.load %arg18[%c16_58, %c0_59] : memref<36x256xf32, #tpu.memory_space<vmem>>, vector<4x256xf32>
    tpu.vector_store %arg18[%c16_58, %c0_59], %80 {strides = array<i32>} : memref<36x256xf32, #tpu.memory_space<vmem>>, vector<4x256xf32>,
    %c255_i32_60 = arith.constant 255 : i32
    %102 = tpu.dynamic_rotate %80 by %c255_i32_60 dim 1 : vector<4x256xf32>, i32 -> vector<4x256xf32>
    %103 = vector.extract_strided_slice %3 {offsets = [5, 0], sizes = [1, 256], strides = [1, 1]} : vector<9x256xf32> to vector<1x256xf32>
    %104 = vector.broadcast %103 : vector<1x256xf32> to vector<4x256xf32>
    %105 = arith.mulf %102, %104 : vector<4x256xf32>
    %c20_61 = arith.constant 20 : index
    %c0_62 = arith.constant 0 : index
    %106 = vector.load %arg18[%c20_61, %c0_62] : memref<36x256xf32, #tpu.memory_space<vmem>>, vector<4x256xf32>
    tpu.vector_store %arg18[%c20_61, %c0_62], %105 {strides = array<i32>} : memref<36x256xf32, #tpu.memory_space<vmem>>, vector<4x256xf32>,
    %c241_i32_63 = arith.constant 241 : i32
    %107 = tpu.dynamic_rotate %80 by %c241_i32_63 dim 1 : vector<4x256xf32>, i32 -> vector<4x256xf32>
    %108 = vector.extract_strided_slice %3 {offsets = [6, 0], sizes = [1, 256], strides = [1, 1]} : vector<9x256xf32> to vector<1x256xf32>
    %109 = vector.broadcast %108 : vector<1x256xf32> to vector<4x256xf32>
    %110 = arith.mulf %107, %109 : vector<4x256xf32>
    %c24_64 = arith.constant 24 : index
    %c0_65 = arith.constant 0 : index
    %111 = vector.load %arg18[%c24_64, %c0_65] : memref<36x256xf32, #tpu.memory_space<vmem>>, vector<4x256xf32>
    tpu.vector_store %arg18[%c24_64, %c0_65], %110 {strides = array<i32>} : memref<36x256xf32, #tpu.memory_space<vmem>>, vector<4x256xf32>,
    %c240_i32_66 = arith.constant 240 : i32
    %112 = tpu.dynamic_rotate %80 by %c240_i32_66 dim 1 : vector<4x256xf32>, i32 -> vector<4x256xf32>
    %113 = vector.extract_strided_slice %3 {offsets = [7, 0], sizes = [1, 256], strides = [1, 1]} : vector<9x256xf32> to vector<1x256xf32>
    %114 = vector.broadcast %113 : vector<1x256xf32> to vector<4x256xf32>
    %115 = arith.mulf %112, %114 : vector<4x256xf32>
    %c28_67 = arith.constant 28 : index
    %c0_68 = arith.constant 0 : index
    %116 = vector.load %arg18[%c28_67, %c0_68] : memref<36x256xf32, #tpu.memory_space<vmem>>, vector<4x256xf32>
    tpu.vector_store %arg18[%c28_67, %c0_68], %115 {strides = array<i32>} : memref<36x256xf32, #tpu.memory_space<vmem>>, vector<4x256xf32>,
    %c239_i32_69 = arith.constant 239 : i32
    %117 = tpu.dynamic_rotate %80 by %c239_i32_69 dim 1 : vector<4x256xf32>, i32 -> vector<4x256xf32>
    %118 = vector.extract_strided_slice %3 {offsets = [8, 0], sizes = [1, 256], strides = [1, 1]} : vector<9x256xf32> to vector<1x256xf32>
    %119 = vector.broadcast %118 : vector<1x256xf32> to vector<4x256xf32>
    %120 = arith.mulf %117, %119 : vector<4x256xf32>
    %c32_70 = arith.constant 32 : index
    %c0_71 = arith.constant 0 : index
    %121 = vector.load %arg18[%c32_70, %c0_71] : memref<36x256xf32, #tpu.memory_space<vmem>>, vector<4x256xf32>
    tpu.vector_store %arg18[%c32_70, %c0_71], %120 {strides = array<i32>} : memref<36x256xf32, #tpu.memory_space<vmem>>, vector<4x256xf32>,
    %c1_72 = arith.constant 1 : index
    %c0_73 = arith.constant 0 : index
    %c0_74 = arith.constant 0 : index
    %122 = vector.load %arg8[%c1_72, %c0_73, %c0_74] : memref<2x4x36xf32, #tpu.memory_space<vmem>>, vector<1x4x36xf32>
    %123 = vector.shape_cast %122 : vector<1x4x36xf32> to vector<4x36xf32>
    %c1_75 = arith.constant 1 : index
    %c0_76 = arith.constant 0 : index
    %c0_77 = arith.constant 0 : index
    %124 = vector.load %arg9[%c1_75, %c0_76, %c0_77] : memref<2x4x1xf32, #tpu.memory_space<vmem>>, vector<1x4x1xf32>
    %125 = vector.shape_cast %124 : vector<1x4x1xf32> to vector<4x1xf32>
    %c0_78 = arith.constant 0 : index
    %c0_79 = arith.constant 0 : index
    %126 = vector.load %arg18[%c0_78, %c0_79] : memref<36x256xf32, #tpu.memory_space<vmem>>, vector<36x256xf32>
    %cst_80 = arith.constant dense<0.000000e+00> : vector<4x256xf32>
    %127 = tpu.matmul %123, %126, %cst_80 {dimension_numbers = #tpu.dot_dimension_numbers<[1], [0], [0], [1], [0, 0, 1, 1], [], []>} : vector<4x36xf32>, vector<36x256xf32>, vector<4x256xf32> -> vector<4x256xf32>
    %128 = vector.broadcast %125 : vector<4x1xf32> to vector<4x256xf32>
    %129 = arith.addf %127, %128 : vector<4x256xf32>
    %cst_81 = arith.constant 0.000000e+00 : f32
    %130 = vector.broadcast %cst_81 : f32 to vector<4x256xf32>
    %131 = arith.maximumf %129, %130 : vector<4x256xf32>
    %132 = arith.addf %71, %131 : vector<4x256xf32>
    %c0_82 = arith.constant 0 : index
    %c0_83 = arith.constant 0 : index
    %133 = vector.load %arg10[%c0_82, %c0_83] : memref<4x4xf32, #tpu.memory_space<vmem>>, vector<4x4xf32>
    %c0_84 = arith.constant 0 : index
    %c0_85 = arith.constant 0 : index
    %134 = vector.load %arg11[%c0_84, %c0_85] : memref<4x1xf32, #tpu.memory_space<vmem>>, vector<4x1xf32>
    %cst_86 = arith.constant dense<0.000000e+00> : vector<4x256xf32>
    %135 = tpu.matmul %133, %132, %cst_86 {dimension_numbers = #tpu.dot_dimension_numbers<[1], [0], [0], [1], [0, 0, 1, 1], [], []>} : vector<4x4xf32>, vector<4x256xf32>, vector<4x256xf32> -> vector<4x256xf32>
    %136 = vector.broadcast %134 : vector<4x1xf32> to vector<4x256xf32>
    %137 = arith.addf %135, %136 : vector<4x256xf32>
    %cst_87 = arith.constant 0.000000e+00 : f32
    %138 = vector.broadcast %cst_87 : f32 to vector<4x256xf32>
    %139 = arith.maximumf %137, %138 : vector<4x256xf32>
    %c0_88 = arith.constant 0 : index
    %c0_89 = arith.constant 0 : index
    %140 = vector.load %arg12[%c0_88, %c0_89] : memref<4x8xf32, #tpu.memory_space<vmem>>, vector<4x8xf32>
    %c0_90 = arith.constant 0 : index
    %c0_91 = arith.constant 0 : index
    %141 = vector.load %arg13[%c0_90, %c0_91] : memref<4x1xf32, #tpu.memory_space<vmem>>, vector<4x1xf32>
    %cst_92 = arith.constant dense<0.000000e+00> : vector<4x256xf32>
    %142 = tpu.matmul %140, %1, %cst_92 {dimension_numbers = #tpu.dot_dimension_numbers<[1], [0], [0], [1], [0, 0, 1, 1], [], []>} : vector<4x8xf32>, vector<8x256xf32>, vector<4x256xf32> -> vector<4x256xf32>
    %143 = vector.broadcast %141 : vector<4x1xf32> to vector<4x256xf32>
    %144 = arith.addf %142, %143 : vector<4x256xf32>
    %cst_93 = arith.constant 0.000000e+00 : f32
    %145 = vector.broadcast %cst_93 : f32 to vector<4x256xf32>
    %146 = arith.maximumf %144, %145 : vector<4x256xf32>
    %c0_94 = arith.constant 0 : index
    %c0_95 = arith.constant 0 : index
    %147 = vector.load %arg14[%c0_94, %c0_95] : memref<8x4xf32, #tpu.memory_space<vmem>>, vector<8x4xf32>
    %cst_96 = arith.constant dense<0.000000e+00> : vector<8x256xf32>
    %148 = tpu.matmul %147, %139, %cst_96 {dimension_numbers = #tpu.dot_dimension_numbers<[1], [0], [0], [1], [0, 0, 1, 1], [], []>} : vector<8x4xf32>, vector<4x256xf32>, vector<8x256xf32> -> vector<8x256xf32>
    %c0_97 = arith.constant 0 : index
    %c0_98 = arith.constant 0 : index
    %149 = vector.load %arg15[%c0_97, %c0_98] : memref<8x4xf32, #tpu.memory_space<vmem>>, vector<8x4xf32>
    %cst_99 = arith.constant dense<0.000000e+00> : vector<8x256xf32>
    %150 = tpu.matmul %149, %146, %cst_99 {dimension_numbers = #tpu.dot_dimension_numbers<[1], [0], [0], [1], [0, 0, 1, 1], [], []>} : vector<8x4xf32>, vector<4x256xf32>, vector<8x256xf32> -> vector<8x256xf32>
    %151 = arith.addf %148, %150 : vector<8x256xf32>
    %c0_100 = arith.constant 0 : index
    %c0_101 = arith.constant 0 : index
    %152 = vector.load %arg16[%c0_100, %c0_101] : memref<8x1xf32, #tpu.memory_space<vmem>>, vector<8x1xf32>
    %153 = vector.broadcast %152 : vector<8x1xf32> to vector<8x256xf32>
    %154 = arith.addf %151, %153 : vector<8x256xf32>
    %cst_102 = arith.constant 0.000000e+00 : f32
    %155 = vector.broadcast %cst_102 : f32 to vector<8x256xf32>
    %156 = arith.maximumf %154, %155 : vector<8x256xf32>
    %c0_103 = arith.constant 0 : index
    %c0_104 = arith.constant 0 : index
    %c0_105 = arith.constant 0 : index
    %c0_106 = arith.constant 0 : index
    %157 = vector.load %arg17[%c0_103, %c0_104, %c0_105, %c0_106] : memref<1x1x8x256xf32, #tpu.memory_space<vmem>>, vector<1x1x8x256xf32>
    %158 = vector.shape_cast %157 : vector<1x1x8x256xf32> to vector<8x256xf32>
    %159 = vector.shape_cast %156 : vector<8x256xf32> to vector<1x1x8x256xf32>
    tpu.vector_store %arg17[%c0_103, %c0_104, %c0_105, %c0_106], %159 {strides = array<i32>} : memref<1x1x8x256xf32, #tpu.memory_space<vmem>>, vector<1x1x8x256xf32>,
    return
  }
  func.func @transform_0(%arg0: i32, %arg1: i32) -> (i32, i32, i32, i32) {
    %c0_i32 = arith.constant 0 : i32
    %c0_i32_0 = arith.constant 0 : i32
    %c0_i32_1 = arith.constant 0 : i32
    return %arg0, %arg1, %c0_i32, %c0_i32_0 : i32, i32, i32, i32
  }
  func.func @transform_1(%arg0: i32, %arg1: i32) -> (i32, i32, i32) {
    %c0_i32 = arith.constant 0 : i32
    %c0_i32_0 = arith.constant 0 : i32
    %c0_i32_1 = arith.constant 0 : i32
    return %arg1, %c0_i32, %c0_i32_0 : i32, i32, i32
  }
  func.func @transform_2(%arg0: i32, %arg1: i32) -> (i32, i32) {
    %c0_i32 = arith.constant 0 : i32
    %c0_i32_0 = arith.constant 0 : i32
    %c0_i32_1 = arith.constant 0 : i32
    return %c0_i32, %c0_i32_0 : i32, i32
  }
  func.func @transform_3(%arg0: i32, %arg1: i32) -> (i32, i32) {
    %c0_i32 = arith.constant 0 : i32
    %c0_i32_0 = arith.constant 0 : i32
    %c0_i32_1 = arith.constant 0 : i32
    return %c0_i32, %c0_i32_0 : i32, i32
  }
  func.func @transform_4(%arg0: i32, %arg1: i32) -> (i32, i32, i32) {
    %c0_i32 = arith.constant 0 : i32
    %c0_i32_0 = arith.constant 0 : i32
    %c0_i32_1 = arith.constant 0 : i32
    %c0_i32_2 = arith.constant 0 : i32
    return %c0_i32, %c0_i32_0, %c0_i32_1 : i32, i32, i32
  }
  func.func @transform_5(%arg0: i32, %arg1: i32) -> (i32, i32, i32) {
    %c0_i32 = arith.constant 0 : i32
    %c0_i32_0 = arith.constant 0 : i32
    %c0_i32_1 = arith.constant 0 : i32
    %c0_i32_2 = arith.constant 0 : i32
    return %c0_i32, %c0_i32_0, %c0_i32_1 : i32, i32, i32
  }
  func.func @transform_6(%arg0: i32, %arg1: i32) -> (i32, i32, i32) {
    %c0_i32 = arith.constant 0 : i32
    %c0_i32_0 = arith.constant 0 : i32
    %c0_i32_1 = arith.constant 0 : i32
    %c0_i32_2 = arith.constant 0 : i32
    return %c0_i32, %c0_i32_0, %c0_i32_1 : i32, i32, i32
  }
  func.func @transform_7(%arg0: i32, %arg1: i32) -> (i32, i32, i32) {
    %c0_i32 = arith.constant 0 : i32
    %c0_i32_0 = arith.constant 0 : i32
    %c0_i32_1 = arith.constant 0 : i32
    %c0_i32_2 = arith.constant 0 : i32
    return %c0_i32, %c0_i32_0, %c0_i32_1 : i32, i32, i32
  }
  func.func @transform_8(%arg0: i32, %arg1: i32) -> (i32, i32) {
    %c0_i32 = arith.constant 0 : i32
    %c0_i32_0 = arith.constant 0 : i32
    %c0_i32_1 = arith.constant 0 : i32
    return %c0_i32, %c0_i32_0 : i32, i32
  }
  func.func @transform_9(%arg0: i32, %arg1: i32) -> (i32, i32) {
    %c0_i32 = arith.constant 0 : i32
    %c0_i32_0 = arith.constant 0 : i32
    %c0_i32_1 = arith.constant 0 : i32
    return %c0_i32, %c0_i32_0 : i32, i32
  }
  func.func @transform_10(%arg0: i32, %arg1: i32) -> (i32, i32) {
    %c0_i32 = arith.constant 0 : i32
    %c0_i32_0 = arith.constant 0 : i32
    %c0_i32_1 = arith.constant 0 : i32
    return %c0_i32, %c0_i32_0 : i32, i32
  }
  func.func @transform_11(%arg0: i32, %arg1: i32) -> (i32, i32) {
    %c0_i32 = arith.constant 0 : i32
    %c0_i32_0 = arith.constant 0 : i32
    %c0_i32_1 = arith.constant 0 : i32
    return %c0_i32, %c0_i32_0 : i32, i32
  }
  func.func @transform_12(%arg0: i32, %arg1: i32) -> (i32, i32) {
    %c0_i32 = arith.constant 0 : i32
    %c0_i32_0 = arith.constant 0 : i32
    %c0_i32_1 = arith.constant 0 : i32
    return %c0_i32, %c0_i32_0 : i32, i32
  }
  func.func @transform_13(%arg0: i32, %arg1: i32) -> (i32, i32) {
    %c0_i32 = arith.constant 0 : i32
    %c0_i32_0 = arith.constant 0 : i32
    %c0_i32_1 = arith.constant 0 : i32
    return %c0_i32, %c0_i32_0 : i32, i32
  }
  func.func @transform_14(%arg0: i32, %arg1: i32) -> (i32, i32) {
    %c0_i32 = arith.constant 0 : i32
    %c0_i32_0 = arith.constant 0 : i32
    %c0_i32_1 = arith.constant 0 : i32
    return %c0_i32, %c0_i32_0 : i32, i32
  }
  func.func @transform_15(%arg0: i32, %arg1: i32) -> (i32, i32, i32, i32) {
    %c0_i32 = arith.constant 0 : i32
    %c0_i32_0 = arith.constant 0 : i32
    %c0_i32_1 = arith.constant 0 : i32
    return %arg0, %arg1, %c0_i32, %c0_i32_0 : i32, i32, i32, i32
  }
}

</mosaic_0001>

<bundles_post_ra>
// kernel: csp_block_pallas.1
= control target key start
LH: loop header
LB: loop body
LE: loop exit
PB: predicated region body
PF: predicated region fallthrough
CT: control target
= control target key end

     0   :  { %s1979_s18 = smov 0   ;;  %s1981_s19 = smov 0   ;;  %s2341_s0 = inlined_call_operand.vmem [shape: f32[2,1,8,256], index: 0, kind: input, shape index: {}]   ;;  %s2342_s1 = inlined_call_operand.vmem [shape: f32[1,9,256], index: 1, kind: input, shape index: {}]   ;;  %s2343_s2 = inlined_call_operand.vmem [shape: f32[4,8], index: 2, kind: input, shape index: {}]   ;;  %s2344_s3 = inlined_call_operand.vmem [shape: f32[4,1], index: 3, kind: input, shape index: {}]   ;;  %s2345_s4 = inlined_call_operand.vmem [shape: f32[2,4,4], index: 4, kind: input, shape index: {}]   ;;  %s2346_s5 = inlined_call_operand.vmem [shape: f32[2,4,1], index: 5, kind: input, shape index: {}]   ;;  %s2347_s6 = inlined_call_operand.vmem [shape: f32[2,4,36], index: 6, kind: input, shape index: {}]   ;;  %s2348_s7 = inlined_call_operand.vmem [shape: f32[2,4,1], index: 7, kind: input, shape index: {}]   ;;  %s2349_s8 = inlined_call_operand.vmem [shape: f32[4,4], index: 8, kind: input, shape index: {}]   ;;  %s2350_s9 = inlined_call_operand.vmem [shape: f32[4,1], index: 9, kind: input, shape index: {}]   ;;  %s2351_s10 = inlined_call_operand.vmem [shape: f32[4,8], index: 10, kind: input, shape index: {}]   ;;  %s2352_s11 = inlined_call_operand.vmem [shape: f32[4,1], index: 11, kind: input, shape index: {}]   ;;  %s2353_s12 = inlined_call_operand.vmem [shape: f32[8,4], index: 12, kind: input, shape index: {}]   ;;  %s2354_s13 = inlined_call_operand.vmem [shape: f32[8,4], index: 13, kind: input, shape index: {}]   ;;  %s2355_s14 = inlined_call_operand.vmem [shape: f32[8,1], index: 14, kind: input, shape index: {}]   ;;  %s2356_s15 = inlined_call_operand.vmem [shape: f32[2,1,8,256], index: 15, kind: output, shape index: {}]  }
   0x1   :  { %s1983_s20 = smov 0  }
   0x2 LB: > { %s37_s21 = sadd.s32 1, %s1883_s19  ;;  %p1773_p0 = scmp.ge.s32.totalorder %s1887_s20, 1  ;;  %s1887_s20 = sphi %s1983_s20, %s25_s20   ;;  %s1883_s19 = sphi %s1981_s19, %s2366_s19   ;;  %s1879_s18 = sphi %s1979_s18, %s2365_s18  }
   0x3   : > { %p39_p1 = scmp.ge.s32.totalorder %s37_s21, 2  ;;  %p467_p2 = scmp.lt.s32.totalorder %s1887_s20, 3 }
   0x5   : > { %s2368_s21 = smov (%p39_p1, %s37_s21), 0  ;;  %p468_p3 = pnand %p1773_p0, %p467_p2 }
   0x6   : > { %p528_p4 = scmp.lt.s32.totalorder (!%p468_p3), %s1879_s18, 1  ;;  %v1889_v0 = vmov (!%p468_p3), 0.0   ;;  %v1890_v1 = vmov (!%p468_p3), 0   ;;  %v558_v2 = vld [vmem:[%s2344_s3] sm:$0xf] (!%p468_p3)  ;;  %vm564_vm0 = vcmask (!%p468_p3), 64512   ;;  %v736_v23 = vlaneseq (!%p468_p3) }
   0x7   : > { %471 = sbr.rel (%p468_p3) target bundleno = 1883 (0x75b), region = 80  ;;  %632 = vmatprep.mubr.f32.mxu0 (!%p468_p3), %v1889_v0  ;;  %1863 = vset.pattern.permute.xlu0 (!%p468_p3), %v1890_v1  ;;  %v642_v3 = vld [vmem:[%s2346_s5] sm:$0xf] (!%p468_p3)  ;;  %vm652_vm1 = vcmask (!%p468_p3), 1043456   ;;  %vm648_vm2 = vcmask (!%p468_p3), 31744   ;;  %s1891_s23 = smov (!%p468_p3), 1  }
   0x8   : > { %561 = vperm.xlu0 (!%p468_p3), %1863, %v558_v2   ;;  %723 = vmatprep.mubr.f32.mxu1 (!%p468_p3), %v1889_v0  ;;  %v557_v6 = vld [vmem:[%s2343_s2] sm:$0xf] (!%p468_p3)  ;;  %s1892_s24 = smov (!%p468_p3), 16   ;;  %s1893_s25 = smov (!%p468_p3), 17   ;;  %v2060_v24 = vshrl.u32 (!%p468_p3), %v736_v23, 7  ;;  %v2062_v25 = vand.u32 (!%p468_p3), 127, %v736_v23 }
   0x9   : > { %1864 = vset.pattern.permute.xlu1 (!%p468_p3), %v1890_v1  ;;  %v641_v14 = vld [vmem:[%s2345_s4] sm:$0xf] (!%p468_p3)  ;;  %s1894_s27 = smov (!%p468_p3), 15   ;;  %s2358_s28 = smov (!%p468_p3), 127   ;;  %v2073_v28 = vld [vmem:[%s2342_s1 + $0x8] sm:$0xff] (!%p468_p3)  ;;  %vm929_vm11 = vcmask (!%p468_p3), 293888  }
   0xa   : > { %s1897_s30 = smov (!%p468_p3), 113   ;;  %s1898_s16 = smov (!%p468_p3), 111   ;;  %v913_v22 = vld [vmem:[%s2348_s7] sm:$0xf] (!%p468_p3)  ;;  %v762_v26 = vsub.s32 (!%p468_p3), 1, %v2060_v24  ;;  %v806_v31 = vsub.s32 (!%p468_p3), 3, %v2060_v24 }
   0xb   : > { %v2068_v27 = vld [vmem:[%s2342_s1] sm:$0xff] (!%p468_p3)  ;;  %vm757_vm3 = vcmp.lt.s32.totalorder (!%p468_p3), %v2062_v25, 16  ;;  %vm801_vm4 = vcmp.lt.s32.totalorder (!%p468_p3), %v2062_v25, 1  ;;  %v743_v42 = vsub.s32 (!%p468_p3), 0, %v2060_v24  ;;  %vm738_vm5 = vcmp.lt.s32.totalorder (!%p468_p3), %v2062_v25, 17 }
   0xc   : > { %645 = vperm.xlu0 (!%p468_p3), %1863, %v642_v3   ;;  %v2078_v32 = vrot.slane (!%p468_p3), %v2068_v27, %v762_v26  ;;  %v2081_v33 = vrot.slane (!%p468_p3), %v2073_v28, %v762_v26  ;;  %v2089_v38 = vrot.slane (!%p468_p3), %v2068_v27, %v806_v31  ;;  %v2094_v41 = vrot.slane (!%p468_p3), %v2073_v28, %v806_v31 }
   0xd   : > { %v787_v49 = vsub.s32 (!%p468_p3), 2, %v2060_v24  ;;  %v2106_v52 = vrot.slane (!%p468_p3), %v2068_v27, %v743_v42  ;;  %v2109_v53 = vrot.slane (!%p468_p3), %v2073_v28, %v743_v42  ;;  %vm782_vm6 = vcmp.lt.s32.totalorder (!%p468_p3), %v2062_v25, 15 }
   0xe   : > { %s2370_s18 = smov (!%p528_p4, %s1879_s18), 1  ;;  %v833_v1 = vsub.s32 5, %v2060_v24  ;;  %vm828_vm7 = vcmp.lt.s32.totalorder %v2062_v25, 127  ;;  %vm872_vm8 = vcmp.lt.s32.totalorder %v2062_v25, 112  ;;  %v858_v26 = vsub.s32 6, %v2060_v24 }
   0xf   : > { %s2357_s26 = sshll.u32 %s2370_s18, 4  ;;  %v2117_v59 = vrot.slane %v2068_v27, %v787_v49  ;;  %v2122_v63 = vrot.slane %v2073_v28, %v787_v49  ;;  %vm853_vm9 = vcmp.lt.s32.totalorder %v2062_v25, 113  ;;  %vm897_vm10 = vcmp.lt.s32.totalorder %v2062_v25, 111  ;;  %v1792_v25 = vld [vmem:[%s2347_s6 + $0x4] sm:$0xf] }
  0x10   : > { %s536_s29 = scalar_lea.vmem %s2341_s0, %s2357_s26  ;;  %s2362_s26 = smov 127  }
  0x11   : > { %v2013_v4 = vld [vmem:[%s536_s29 + $0x8] sm:$0xff]  ;;  %v2015_v5 = vld [vmem:[%s536_s29] sm:$0xff]  ;;  %s2360_s29 = smov 112  }
  0x12   : > { %568 = vmatprep.subr.mxu0 %v2013_v4 }
  0x13   : > { %569 = vmatpush1.msra.mxu0 %v2015_v5 }
  0x14   : > { %1778 = vmatmul.mubr.msk.f32.vlgmr.msra.gmra.mrb[0].mxu0 %vm564_vm0, %v557_v6 }
  0x15   : > { %1003 = vmatprep.mubr.f32.mxu0 %v1889_v0 }
  0x87   : > { %v562_v7 = vpop.permute.xlu0 %561 }
  0x8b   : > { %v646_v15 = vpop.permute.xlu0 %645 }
  0xe7   : > { %v634_v8 = vpop.f32.mrb[0].mxu0 }
  0xe8   : > { %v2024_v9 = vadd.f32 %v634_v8, %v562_v7  ;;  %v636_v10 = vpop.f32.mrb[1].mxu0 }
  0xe9   : > { %v2026_v11 = vadd.f32 %v636_v10, %v562_v7  ;;  %v877_v7 = vsub.s32 7, %v2060_v24  ;;  %v2161_v24 = vrot.slane %v2068_v27, %v858_v26 }
  0xea   : > { %v639_v13 = vmax.f32 %v2024_v9, 0.0 }
  0xeb   : > { %v640_v12 = vmax.f32 %v2026_v11, 0.0  ;;  %v2150_v23 = vrot.slane %v2073_v28, %v877_v7 }
  0xed   : > { %1779 = vmatprep.subr.msk.mxu1 %vm652_vm1, %v640_v12 }
  0xee   : > { %1780 = vmatpush1.msk.msra.mxu1 %vm652_vm1, %v639_v13 }
  0xef   : > { %1781 = vmatmul.mubr.msk.f32.vlgmr.msra.gmra.mrb[0].mxu1 %vm648_vm2, %v641_v14  ;;  %v2134_v14 = vrot.slane %v2068_v27, %v833_v1 }
  0xf0   : > { %1096 = vmatprep.mubr.f32.mxu1 %v1889_v0 }
 0x1c2   : > { %v725_v16 = vpop.f32.mrb[0].mxu1 }
 0x1c3   : > { %v726_v17 = vadd.f32 %v725_v16, %v646_v15  ;;  %v727_v18 = vpop.f32.mrb[1].mxu1 }
 0x1c4   : > { %v728_v19 = vadd.f32 %v727_v18, %v646_v15  ;;  %v2137_v15 = vrot.slane %v2073_v28, %v833_v1 }
 0x1c5   : > { %v730_v20 = vmax.f32 %v726_v17, 0.0 }
 0x1c6   : > { %v731_v21 = vmax.f32 %v728_v19, 0.0 }
 0x1c7   : > { %822 = vst [vmem:[#allocation2 + $0x20] sm:$0xf] %v730_v20  ;;  %797 = vrot.lane.b32.xlu0 %v730_v20, %s1891_s23  ;;  %753 = vrot.lane.b32.xlu1 %v730_v20, %s1892_s24 }
 0x1c8   : > { %823 = vst [vmem:[#allocation2 + $0x28] sm:$0xf] %v731_v21 }
 0x1cb   : > { %732 = vrot.lane.b32.xlu0 %v730_v20, %s1893_s25  ;;  %755 = vrot.lane.b32.xlu1 %v731_v21, %s1892_s24 }
 0x1cf   : > { %778 = vrot.lane.b32.xlu0 %v730_v20, %s1894_s27  ;;  %799 = vrot.lane.b32.xlu1 %v731_v21, %s1891_s23 }
 0x1d3   : > { %824 = vrot.lane.b32.xlu0 %v730_v20, %s2358_s28  ;;  %734 = vrot.lane.b32.xlu1 %v731_v21, %s1893_s25 }
 0x1d7   : > { %868 = vrot.lane.b32.xlu0 %v730_v20, %s2360_s29  ;;  %780 = vrot.lane.b32.xlu1 %v731_v21, %s1894_s27 }
 0x1db   : > { %849 = vrot.lane.b32.xlu0 %v730_v20, %s1897_s30  ;;  %826 = vrot.lane.b32.xlu1 %v731_v21, %s2358_s28  ;;  %s2363_s28 = smov 112  }
 0x1df   : > { %893 = vrot.lane.b32.xlu0 %v730_v20, %s1898_s16  ;;  %870 = vrot.lane.b32.xlu1 %v731_v21, %s2360_s29  ;;  %v2145_v20 = vrot.slane %v2068_v27, %v877_v7 }
 0x1e3   : > { %926 = vperm.xlu0 %1863, %v913_v22   ;;  %851 = vrot.lane.b32.xlu1 %v731_v21, %s1897_s30 }
 0x1e7   : > { %895 = vrot.lane.b32.xlu1 %v731_v21, %s1898_s16 }
 0x239   : > { %v798_v29 = vpop.permute.xlu0 %797  ;;  %v754_v30 = vpop.permute.xlu1 %753 }
 0x23d   : > { %v733_v34 = vpop.permute.xlu0 %732  ;;  %v756_v35 = vpop.permute.xlu1 %755 }
 0x23e   : > { %v758_v36 = vsel %vm757_vm3, %v754_v30, %v756_v35  ;;  %v759_v37 = vsel %vm757_vm3, %v756_v35, %v754_v30 }
 0x23f   : > { %v768_v39 = vmul.f32 %v2078_v32, %v759_v37  ;;  %v769_v40 = vmul.f32 %v2081_v33, %v758_v36 }
 0x241   : > { %v772_v43 = vrot.slane %v768_v39, 4  ;;  %v773_v44 = vrot.slane %v769_v40, 4  ;;  %v779_v45 = vpop.permute.xlu0 %778  ;;  %v800_v46 = vpop.permute.xlu1 %799  ;;  %v2164_v40 = vrot.slane %v2073_v28, %v858_v26 }
 0x242   : > { %v802_v47 = vsel %vm801_vm4, %v798_v29, %v800_v46  ;;  %v803_v48 = vsel %vm801_vm4, %v800_v46, %v798_v29 }
 0x243   : > { %776 = vst [vmem:[#allocation2] sm:$0xf0] %v772_v43  ;;  %777 = vst [vmem:[#allocation2 + $0x8] sm:$0xf0] %v773_v44  ;;  %v812_v50 = vmul.f32 %v2089_v38, %v803_v48  ;;  %v813_v51 = vmul.f32 %v2094_v41, %v802_v47 }
 0x245   : > { %v816_v54 = vrot.slane %v812_v50, 4  ;;  %v817_v55 = vrot.slane %v813_v51, 4  ;;  %v735_v56 = vpop.permute.xlu1 %734  ;;  %v825_v60 = vpop.permute.xlu0 %824 }
 0x246   : > { %v739_v57 = vsel %vm738_vm5, %v733_v34, %v735_v56  ;;  %v740_v58 = vsel %vm738_vm5, %v735_v56, %v733_v34  ;;  %v2181_v56 = vld [vmem:[%s2342_s1 + $0x18] ss:$0 sm:$0xff] }
 0x247   : > { %820 = vst [vmem:[#allocation2 + $0x10] sm:$0xf0] %v816_v54  ;;  %821 = vst [vmem:[#allocation2 + $0x18] sm:$0xf0] %v817_v55  ;;  %v749_v61 = vmul.f32 %v2106_v52, %v740_v58  ;;  %v750_v62 = vmul.f32 %v2109_v53, %v739_v57  ;;  %v2176_v55 = vld [vmem:[%s2342_s1 + $0x10] ss:$0 sm:$0xff] }
 0x249   : > { %751 = vst [vmem:[#allocation2] sm:$0xf] %v749_v61  ;;  %752 = vst [vmem:[#allocation2 + $0x8] sm:$0xf] %v750_v62  ;;  %v781_v2 = vpop.permute.xlu1 %780  ;;  %v869_v16 = vpop.permute.xlu0 %868 }
 0x24a   : > { %v783_v3 = vsel %vm782_vm6, %v779_v45, %v781_v2  ;;  %v784_v6 = vsel %vm782_vm6, %v781_v2, %v779_v45 }
 0x24b   : > { %v793_v8 = vmul.f32 %v2117_v59, %v784_v6  ;;  %v794_v10 = vmul.f32 %v2122_v63, %v783_v3 }
 0x24d   : > { %795 = vst [vmem:[#allocation2 + $0x10] sm:$0xf] %v793_v8  ;;  %796 = vst [vmem:[#allocation2 + $0x18] sm:$0xf] %v794_v10  ;;  %v827_v17 = vpop.permute.xlu1 %826  ;;  %v850_v36 = vpop.permute.xlu0 %849 }
 0x24e   : > { %v829_v18 = vsel %vm828_vm7, %v825_v60, %v827_v17  ;;  %v830_v19 = vsel %vm828_vm7, %v827_v17, %v825_v60  ;;  %v912_v17 = vld [vmem:[%s2347_s6] sm:$0xf] }
 0x24f   : > { %v839_v21 = vmul.f32 %v2134_v14, %v829_v18  ;;  %v840_v22 = vmul.f32 %v2137_v15, %v830_v19  ;;  %v1788_v19 = vld [vmem:[%s2346_s5 + $0x4] sm:$0xf] }
 0x250   : > { %v915_v42 = vld [vmem:[#allocation2 + $0x8] sm:$0xff]  ;;  %v914_v44 = vld [vmem:[#allocation2] sm:$0xff]  ;;  %1020 = vperm.xlu1 %1864, %v1788_v19  }
 0x251   : > { %v843_v29 = vrot.slane %v839_v21, 4  ;;  %v844_v30 = vrot.slane %v840_v22, 4  ;;  %v871_v31 = vpop.permute.xlu1 %870  ;;  %v894_v57 = vpop.permute.xlu0 %893 }
 0x252   : > { %v873_v34 = vsel %vm872_vm8, %v869_v16, %v871_v31  ;;  %v874_v35 = vsel %vm872_vm8, %v871_v31, %v869_v16 }
 0x253   : > { %847 = vst [vmem:[#allocation2 + $0x20] sm:$0xf0] %v843_v29  ;;  %848 = vst [vmem:[#allocation2 + $0x28] sm:$0xf0] %v844_v30  ;;  %v883_v37 = vmul.f32 %v2145_v20, %v873_v34  ;;  %v884_v39 = vmul.f32 %v2150_v23, %v874_v35 }
 0x254   : > { %v917_v43 = vld [vmem:[#allocation2 + $0x18] sm:$0xff]  ;;  %v916_v45 = vld [vmem:[#allocation2 + $0x10] sm:$0xff] }
 0x255   : > { %v887_v46 = vrot.slane %v883_v37, 4  ;;  %v888_v47 = vrot.slane %v884_v39, 4  ;;  %v852_v48 = vpop.permute.xlu1 %851  ;;  %v1811_v49 = vpack.c.bf16 %v917_v43, %v915_v42  ;;  %v1813_v50 = vpack.c.bf16 %v916_v45, %v914_v44  ;;  %v1787_v37 = vld [vmem:[%s2345_s4 + $0x4] sm:$0xf]  ;;  %v1404_v45 = vld [vmem:[%s2352_s11] sm:$0xf] }
 0x256   : > { %v854_v51 = vsel %vm853_vm9, %v850_v36, %v852_v48  ;;  %v855_v54 = vsel %vm853_vm9, %v852_v48, %v850_v36  ;;  %v1793_v44 = vld [vmem:[%s2348_s7 + $0x4] sm:$0xf] }
 0x257   : > { %891 = vst [vmem:[#allocation2 + $0x30] sm:$0xf0] %v887_v46  ;;  %892 = vst [vmem:[#allocation2 + $0x38] sm:$0xf0] %v888_v47  ;;  %v864_v27 = vmul.f32 %v2161_v24, %v854_v51  ;;  %v865_v28 = vmul.f32 %v2164_v40, %v855_v54  ;;  %1812 = vmatprep.subr.bf16.mxu0 %v1811_v49  ;;  %v1315_v46 = vld [vmem:[%s2350_s9] sm:$0xf] }
 0x258   : > { %1814 = vmatpush1.bf16.msra.mxu0 %v1813_v50  ;;  %v1648_v47 = vld [vmem:[%s2355_s14] sm:$0xff] }
 0x259   : > { %866 = vst [vmem:[#allocation2 + $0x30] sm:$0xf] %v864_v27  ;;  %867 = vst [vmem:[#allocation2 + $0x38] sm:$0xf] %v865_v28  ;;  %v896_v58 = vpop.permute.xlu1 %895 }
 0x25a   : > { %v898_v60 = vsel %vm897_vm10, %v894_v57, %v896_v58  ;;  %v899_v61 = vsel %vm897_vm10, %v896_v58, %v894_v57  ;;  %v919_v2 = vld [vmem:[#allocation2 + $0x28] sm:$0xff]  ;;  %v918_v6 = vld [vmem:[#allocation2 + $0x20] sm:$0xff] }
 0x25b   : > { %v908_v62 = vmul.f32 %v2176_v55, %v898_v60  ;;  %v909_v1 = vmul.f32 %v2181_v56, %v899_v61 }
 0x25d   : > { %910 = vst [vmem:[#allocation2 + $0x40] sm:$0xf] %v908_v62  ;;  %911 = vst [vmem:[#allocation2 + $0x48] sm:$0xf] %v909_v1 }
 0x260   : > { %v921_v3 = vld [vmem:[#allocation2 + $0x38] sm:$0xff]  ;;  %v920_v7 = vld [vmem:[#allocation2 + $0x30] sm:$0xff] }
 0x261   : > { %v1815_v8 = vpack.c.bf16 %v921_v3, %v919_v2  ;;  %v1817_v10 = vpack.c.bf16 %v920_v7, %v918_v6 }
 0x262   : > { %v927_v21 = vpop.permute.xlu0 %926 }
 0x263   : > { %1816 = vmatprep.subr.bf16.mxu0 %v1815_v8 }
 0x264   : > { %1818 = vmatpush1.bf16.msra.mxu0 %v1817_v10  ;;  %v923_v16 = vld [vmem:[#allocation2 + $0x48] sm:$0xf]  ;;  %v922_v18 = vld [vmem:[#allocation2 + $0x40] sm:$0xf] }
 0x265   : > { %1784 = vmatprep.subr.msk.mxu0 %vm652_vm1, %v923_v16 }
 0x268   : > { %1785 = vmatpush1.msk.msra.mxu0 %vm652_vm1, %v922_v18 }
 0x269   : > { %1786 = vmatmul.mubr.msk.f32.vlgmr.msra.gmra.mrb[2].mxu0 %vm929_vm11, %v912_v17 }
 0x26a   : > { %1394 = vmatprep.mubr.f32.mxu0 %v1889_v0 }
 0x2cf   : > { %v1021_v11 = vpop.permute.xlu1 %1020 }
 0x33c   : > { %v1005_v22 = vpop.f32.mrb[2].mxu0 }
 0x33d   : > { %v1006_v26 = vadd.f32 %v1005_v22, %v927_v21  ;;  %v1007_v29 = vpop.f32.mrb[3].mxu0 }
 0x33e   : > { %v1008_v30 = vadd.f32 %v1007_v29, %v927_v21 }
 0x33f   : > { %v1010_v31 = vmax.f32 %v1006_v26, 0.0 }
 0x340   : > { %v1011_v34 = vmax.f32 %v1008_v30, 0.0 }
 0x341   : > { %v2205_v36 = vadd.f32 %v1010_v31, %v639_v13 }
 0x342   : > { %v2201_v35 = vadd.f32 %v1011_v34, %v640_v12 }
 0x344   : > { %1789 = vmatprep.subr.msk.mxu1 %vm652_vm1, %v2201_v35 }
 0x345   : > { %1790 = vmatpush1.msk.msra.mxu1 %vm652_vm1, %v2205_v36 }
 0x346   : > { %1791 = vmatmul.mubr.msk.f32.vlgmr.msra.gmra.mrb[2].mxu1 %vm648_vm2, %v1787_v37 }
 0x347   : > { %1303 = vmatprep.mubr.f32.mxu1 %v1889_v0 }
 0x419   : > { %v1098_v12 = vpop.f32.mrb[2].mxu1 }
 0x41a   : > { %v1099_v39 = vadd.f32 %v1098_v12, %v1021_v11  ;;  %v1100_v9 = vpop.f32.mrb[3].mxu1 }
 0x41b   : > { %v1101_v13 = vadd.f32 %v1100_v9, %v1021_v11 }
 0x41c   : > { %v1103_v42 = vmax.f32 %v1099_v39, 0.0 }
 0x41d   : > { %v1104_v43 = vmax.f32 %v1101_v13, 0.0 }
 0x41e   : > { %1157 = vst [vmem:[#allocation2 + $0x20] sm:$0xf] %v1103_v42  ;;  %1115 = vrot.lane.b32.xlu0 %v1103_v42, %s1892_s24 }
 0x41f   : > { %1158 = vst [vmem:[#allocation2 + $0x28] sm:$0xf] %v1104_v43  ;;  %1117 = vrot.lane.b32.xlu1 %v1104_v43, %s1892_s24 }
 0x422   : > { %1141 = vrot.lane.b32.xlu0 %v1103_v42, %s1891_s23 }
 0x423   : > { %1143 = vrot.lane.b32.xlu1 %v1104_v43, %s1891_s23 }
 0x426   : > { %1105 = vrot.lane.b32.xlu0 %v1103_v42, %s1893_s25 }
 0x427   : > { %1107 = vrot.lane.b32.xlu1 %v1104_v43, %s1893_s25 }
 0x42a   : > { %1131 = vrot.lane.b32.xlu0 %v1103_v42, %s1894_s27 }
 0x42b   : > { %1133 = vrot.lane.b32.xlu1 %v1104_v43, %s1894_s27 }
 0x42e   : > { %1159 = vrot.lane.b32.xlu0 %v1103_v42, %s2362_s26 }
 0x42f   : > { %1161 = vrot.lane.b32.xlu1 %v1104_v43, %s2362_s26 }
 0x432   : > { %1185 = vrot.lane.b32.xlu0 %v1103_v42, %s2363_s28 }
 0x433   : > { %1187 = vrot.lane.b32.xlu1 %v1104_v43, %s2363_s28 }
 0x436   : > { %1175 = vrot.lane.b32.xlu0 %v1103_v42, %s1897_s30 }
 0x437   : > { %1177 = vrot.lane.b32.xlu1 %v1104_v43, %s1897_s30  ;;  %s2364_s30 = sshll.u32 %s2370_s18, 4 }
 0x438   : > { %s550_s28 = scalar_lea.vmem %s2356_s15, %s2364_s30 }
 0x43a   : > { %1201 = vrot.lane.b32.xlu0 %v1103_v42, %s1898_s16 }
 0x43b   : > { %1203 = vrot.lane.b32.xlu1 %v1104_v43, %s1898_s16 }
 0x43e   : > { %1227 = vperm.xlu0 %1863, %v1793_v44  }
 0x43f   : > { %1407 = vperm.xlu1 %1864, %v1404_v45  }
 0x442   : > { %1318 = vperm.xlu0 %1863, %v1315_v46  }
 0x443   : > { %1651 = vperm.xlu1 %1864, %v1648_v47  }
 0x490   : > { %v1116_v48 = vpop.permute.xlu0 %1115 }
 0x491   : > { %v1118_v49 = vpop.permute.xlu1 %1117 }
 0x492   : > { %v1119_v50 = vsel %vm757_vm3, %v1116_v48, %v1118_v49  ;;  %v1120_v51 = vsel %vm757_vm3, %v1118_v49, %v1116_v48 }
 0x493   : > { %v1121_v54 = vmul.f32 %v1120_v51, %v2078_v32  ;;  %v1122_v27 = vmul.f32 %v1119_v50, %v2081_v33 }
 0x494   : > { %v1142_v28 = vpop.permute.xlu0 %1141 }
 0x495   : > { %v1125_v57 = vrot.slane %v1121_v54, 4  ;;  %v1126_v58 = vrot.slane %v1122_v27, 4  ;;  %v1144_v60 = vpop.permute.xlu1 %1143 }
 0x496   : > { %v1145_v61 = vsel %vm801_vm4, %v1142_v28, %v1144_v60  ;;  %v1146_v62 = vsel %vm801_vm4, %v1144_v60, %v1142_v28 }
 0x497   : > { %1129 = vst [vmem:[#allocation2] sm:$0xf0] %v1125_v57  ;;  %1130 = vst [vmem:[#allocation2 + $0x8] sm:$0xf0] %v1126_v58  ;;  %v1147_v1 = vmul.f32 %v1146_v62, %v2089_v38  ;;  %v1148_v2 = vmul.f32 %v1145_v61, %v2094_v41 }
 0x498   : > { %v1106_v3 = vpop.permute.xlu0 %1105 }
 0x499   : > { %v1151_v32 = vrot.slane %v1147_v1, 4  ;;  %v1152_v6 = vrot.slane %v1148_v2, 4  ;;  %v1108_v33 = vpop.permute.xlu1 %1107 }
 0x49a   : > { %v1109_v7 = vsel %vm738_vm5, %v1106_v3, %v1108_v33  ;;  %v1110_v8 = vsel %vm738_vm5, %v1108_v33, %v1106_v3 }
 0x49b   : > { %1155 = vst [vmem:[#allocation2 + $0x10] sm:$0xf0] %v1151_v32  ;;  %1156 = vst [vmem:[#allocation2 + $0x18] sm:$0xf0] %v1152_v6  ;;  %v1111_v10 = vmul.f32 %v1110_v8, %v2106_v52  ;;  %v1112_v16 = vmul.f32 %v1109_v7, %v2109_v53 }
 0x49c   : > { %v1132_v17 = vpop.permute.xlu0 %1131 }
 0x49d   : > { %1113 = vst [vmem:[#allocation2] sm:$0xf] %v1111_v10  ;;  %1114 = vst [vmem:[#allocation2 + $0x8] sm:$0xf] %v1112_v16  ;;  %v1134_v38 = vpop.permute.xlu1 %1133  ;;  %v1314_v16 = vld [vmem:[%s2349_s8] sm:$0xf] }
 0x49e   : > { %v1135_v41 = vsel %vm782_vm6, %v1132_v17, %v1134_v38  ;;  %v1136_v18 = vsel %vm782_vm6, %v1134_v38, %v1132_v17 }
 0x49f   : > { %v1137_v19 = vmul.f32 %v1136_v18, %v2117_v59  ;;  %v1138_v21 = vmul.f32 %v1135_v41, %v2122_v63 }
 0x4a0   : > { %v1160_v22 = vpop.permute.xlu0 %1159 }
 0x4a1   : > { %1139 = vst [vmem:[#allocation2 + $0x10] sm:$0xf] %v1137_v19  ;;  %1140 = vst [vmem:[#allocation2 + $0x18] sm:$0xf] %v1138_v21  ;;  %v1162_v52 = vpop.permute.xlu1 %1161 }
 0x4a2   : > { %v1163_v53 = vsel %vm828_vm7, %v1160_v22, %v1162_v52  ;;  %v1164_v26 = vsel %vm828_vm7, %v1162_v52, %v1160_v22 }
 0x4a3   : > { %v1165_v29 = vmul.f32 %v1163_v53, %v2134_v14  ;;  %v1166_v30 = vmul.f32 %v1164_v26, %v2137_v15  ;;  %v1487_v26 = vld [vmem:[%s2354_s13] sm:$0xff] }
 0x4a4   : > { %v1186_v31 = vpop.permute.xlu0 %1185  ;;  %v1216_v9 = vld [vmem:[#allocation2 + $0x8] sm:$0xff]  ;;  %v1215_v15 = vld [vmem:[#allocation2] sm:$0xff] }
 0x4a5   : > { %v1169_v34 = vrot.slane %v1165_v29, 4  ;;  %v1170_v37 = vrot.slane %v1166_v30, 4  ;;  %v1188_v59 = vpop.permute.xlu1 %1187 }
 0x4a6   : > { %v1189_v63 = vsel %vm872_vm8, %v1186_v31, %v1188_v59  ;;  %v1190_v11 = vsel %vm872_vm8, %v1188_v59, %v1186_v31  ;;  %v1486_v31 = vld [vmem:[%s2353_s12] sm:$0xff] }
 0x4a7   : > { %1173 = vst [vmem:[#allocation2 + $0x20] sm:$0xf0] %v1169_v34  ;;  %1174 = vst [vmem:[#allocation2 + $0x28] sm:$0xf0] %v1170_v37  ;;  %v1191_v12 = vmul.f32 %v1189_v63, %v2145_v20  ;;  %v1192_v39 = vmul.f32 %v1190_v11, %v2150_v23 }
 0x4a8   : > { %v1176_v14 = vpop.permute.xlu0 %1175  ;;  %v1218_v13 = vld [vmem:[#allocation2 + $0x18] sm:$0xff]  ;;  %v1217_v42 = vld [vmem:[#allocation2 + $0x10] sm:$0xff] }
 0x4a9   : > { %v1195_v43 = vrot.slane %v1191_v12, 4  ;;  %v1196_v44 = vrot.slane %v1192_v39, 4  ;;  %v1178_v45 = vpop.permute.xlu1 %1177  ;;  %v1819_v46 = vpack.c.bf16 %v1218_v13, %v1216_v9  ;;  %v1821_v47 = vpack.c.bf16 %v1217_v42, %v1215_v15 }
 0x4aa   : > { %v1179_v48 = vsel %vm853_vm9, %v1176_v14, %v1178_v45  ;;  %v1180_v49 = vsel %vm853_vm9, %v1178_v45, %v1176_v14 }
 0x4ab   : > { %1199 = vst [vmem:[#allocation2 + $0x30] sm:$0xf0] %v1195_v43  ;;  %1200 = vst [vmem:[#allocation2 + $0x38] sm:$0xf0] %v1196_v44  ;;  %v1181_v20 = vmul.f32 %v1179_v48, %v2161_v24  ;;  %v1182_v23 = vmul.f32 %v1180_v49, %v2164_v40  ;;  %1820 = vmatprep.subr.bf16.mxu1 %v1819_v46 }
 0x4ac   : > { %1822 = vmatpush1.bf16.msra.mxu1 %v1821_v47  ;;  %v1202_v50 = vpop.permute.xlu0 %1201 }
 0x4ad   : > { %1183 = vst [vmem:[#allocation2 + $0x30] sm:$0xf] %v1181_v20  ;;  %1184 = vst [vmem:[#allocation2 + $0x38] sm:$0xf] %v1182_v23  ;;  %v1204_v51 = vpop.permute.xlu1 %1203 }
 0x4ae   : > { %v1205_v54 = vsel %vm897_vm10, %v1202_v50, %v1204_v51  ;;  %v1206_v27 = vsel %vm897_vm10, %v1204_v51, %v1202_v50  ;;  %v1220_v24 = vld [vmem:[#allocation2 + $0x28] sm:$0xff]  ;;  %v1219_v58 = vld [vmem:[#allocation2 + $0x20] sm:$0xff] }
 0x4af   : > { %v1207_v28 = vmul.f32 %v2176_v55, %v1205_v54  ;;  %v1208_v57 = vmul.f32 %v2181_v56, %v1206_v27 }
 0x4b1   : > { %1209 = vst [vmem:[#allocation2 + $0x40] sm:$0xf] %v1207_v28  ;;  %1210 = vst [vmem:[#allocation2 + $0x48] sm:$0xf] %v1208_v57 }
 0x4b4   : > { %v1222_v40 = vld [vmem:[#allocation2 + $0x38] sm:$0xff]  ;;  %v1221_v60 = vld [vmem:[#allocation2 + $0x30] sm:$0xff] }
 0x4b5   : > { %v1823_v61 = vpack.c.bf16 %v1222_v40, %v1220_v24  ;;  %v1825_v62 = vpack.c.bf16 %v1221_v60, %v1219_v58 }
 0x4b7   : > { %1824 = vmatprep.subr.bf16.mxu1 %v1823_v61 }
 0x4b8   : > { %1826 = vmatpush1.bf16.msra.mxu1 %v1825_v62  ;;  %v1224_v1 = vld [vmem:[#allocation2 + $0x48] sm:$0xf]  ;;  %v1223_v55 = vld [vmem:[#allocation2 + $0x40] sm:$0xf] }
 0x4b9   : > { %1794 = vmatprep.subr.msk.mxu1 %vm652_vm1, %v1224_v1 }
 0x4bc   : > { %1795 = vmatpush1.msk.msra.mxu1 %vm652_vm1, %v1223_v55 }
 0x4bd   : > { %1796 = vmatmul.mubr.msk.f32.vlgmr.msra.gmra.mrb[4].mxu1 %vm929_vm11, %v1792_v25  ;;  %v1228_v56 = vpop.permute.xlu0 %1227 }
 0x4be   : > { %1561 = vmatprep.mubr.f32.mxu1 %v1889_v0  ;;  %v1408_v38 = vpop.permute.xlu1 %1407 }
 0x4c1   : > { %v1319_v18 = vpop.permute.xlu0 %1318 }
 0x4c2   : > { %v1652_v34 = vpop.permute.xlu1 %1651 }
 0x590   : > { %v1305_v2 = vpop.f32.mrb[4].mxu1 }
 0x591   : > { %v1306_v3 = vadd.f32 %v1305_v2, %v1228_v56  ;;  %v1307_v32 = vpop.f32.mrb[5].mxu1 }
 0x592   : > { %v1308_v6 = vadd.f32 %v1307_v32, %v1228_v56 }
 0x593   : > { %v1310_v33 = vmax.f32 %v1306_v3, 0.0 }
 0x594   : > { %v1311_v7 = vmax.f32 %v1308_v6, 0.0 }
 0x595   : > { %v1312_v10 = vadd.f32 %v1310_v33, %v2205_v36 }
 0x596   : > { %v1313_v8 = vadd.f32 %v1311_v7, %v2201_v35  ;;  %v1403_v35 = vld [vmem:[%s2351_s10] sm:$0xf] }
 0x598   : > { %1797 = vmatprep.subr.msk.mxu0 %vm652_vm1, %v1313_v8 }
 0x599   : > { %1798 = vmatpush1.msk.msra.mxu0 %vm652_vm1, %v1312_v10 }
 0x59a   : > { %1799 = vmatmul.mubr.msk.f32.vlgmr.msra.gmra.mrb[4].mxu0 %vm648_vm2, %v1314_v16  ;;  %1413 = vmatprep.subr.mxu0 %v2013_v4 }
 0x59b   : > { %1414 = vmatpush1.msra.mxu0 %v2015_v5  ;;  %1477 = vmatprep.mubr.f32.mxu0 %v1889_v0 }
 0x59e   : > { %1800 = vmatmul.mubr.msk.f32.vlgmr.msra.gmra.mrb[6].mxu0 %vm564_vm0, %v1403_v35 }
 0x66d   : > { %v1396_v36 = vpop.f32.mrb[4].mxu0 }
 0x66e   : > { %v1398_v17 = vpop.f32.mrb[5].mxu0  ;;  %v1397_v4 = vadd.f32 %v1396_v36, %v1319_v18 }
 0x66f   : > { %v1399_v22 = vadd.f32 %v1398_v17, %v1319_v18 }
 0x670   : > { %v1401_v30 = vmax.f32 %v1397_v4, 0.0 }
 0x671   : > { %v1479_v41 = vpop.f32.mrb[6].mxu0  ;;  %v1402_v29 = vmax.f32 %v1399_v22, 0.0 }
 0x672   : > { %v1480_v19 = vadd.f32 %v1479_v41, %v1408_v38  ;;  %v1481_v21 = vpop.f32.mrb[7].mxu0 }
 0x673   : > { %v1482_v52 = vadd.f32 %v1481_v21, %v1408_v38 }
 0x674   : > { %v1484_v5 = vmax.f32 %v1480_v19, 0.0 }
 0x675   : > { %v1485_v53 = vmax.f32 %v1482_v52, 0.0 }
 0x677   : > { %1801 = vmatprep.subr.msk.mxu1 %vm652_vm1, %v1485_v53 }
 0x678   : > { %1802 = vmatpush1.msk.msra.mxu1 %vm652_vm1, %v1484_v5 }
 0x679   : > { %1803 = vmatmul.mubr.msk.f32.vlgmr.msra.gmra.mrb[6].mxu1 %vm648_vm2, %v1487_v26  ;;  %1804 = vmatprep.subr.msk.mxu1 %vm652_vm1, %v1402_v29 }
 0x67a   : > { %1805 = vmatpush1.msk.msra.mxu1 %vm652_vm1, %v1401_v30  ;;  %1641 = vmatprep.mubr.f32.mxu1 %v1889_v0 }
 0x681   : > { %1806 = vmatmul.mubr.msk.f32.vlgmr.msra.gmra.mrb[6].mxu1 %vm648_vm2, %v1486_v31 }
 0x754   : > { %v1643_v37 = vpop.f32.mrb[6].mxu1 }
 0x755   : > { %v1654_v59 = vadd.f32 %v1652_v34, %v1643_v37  ;;  %v1645_v63 = vpop.f32.mrb[7].mxu1 }
 0x756   : > { %v1655_v11 = vadd.f32 %v1652_v34, %v1645_v63 }
 0x757   : > { %v1656_v12 = vmax.f32 %v1654_v59, 0.0 }
 0x758   : > { %v1657_v39 = vmax.f32 %v1655_v11, 0.0 }
 0x759   : > { %1658 = vst [vmem:[%s550_s28] sm:$0xff] %v1656_v12 }
 0x75a   : > { %1659 = vst [vmem:[%s550_s28 + $0x8] sm:$0xff] %v1657_v39 }
 0x75b PF: > { %s25_s20 = sadd.s32 1, %s1887_s20   ;;  %s2365_s18 = smov %s1883_s19 }
 0x75c   : > { %p22_p5 = scmp.ge.s32.totalorder %s25_s20, 4   ;;  %s2366_s19 = smov %s2368_s21 }
 0x75e   :  { %24 = sbr.rel (!%p22_p5) target bundleno = 2 (0x2), region = 117 }

</bundles_post_ra>
